<compile_context>
chip_gen: v7x
topology: tpu7x:2x2x1
jax: 0.10.0
libtpu: 0.0.40
codegen_flags: <defaults>
</compile_context>

<pallas_src>
import functools

import jax
import jax.numpy as jnp
from jax.experimental import pallas as pl
from jax.experimental.pallas import tpu as pltpu


def _round_up(x, m):
    return ((x + m - 1) // m) * m


def _select_tiles(B, K, N):
    """Size-aware tile selection + padded dims.

    Caps: tm<=256 (matches 256-row MXU on v6e/v7x and halves W re-streaming for
    big batches), tn<=512 (lane-dense, multiple of 256 whenever N>=512),
    tk<=1024.  Double-buffered working set with these caps:
      2*x(tm*tk*4) + 2*W(tk*tn*2) + 2*out(tm*tn*4) + acc(tm*tn*4) ~= 5.6 MiB.
    """
    tm = min(_round_up(B, 8), 256)
    tn = min(_round_up(N, 128), 512)
    tk = min(_round_up(K, 128), 1024)

    Bp = _round_up(B, tm)
    Kp = _round_up(K, tk)
    Np = _round_up(N, tn)

    # v7x megacore: guarantee >=2 blocks on a "parallel" axis when the shapes
    # allow, so both TensorCores (and their DMA share) get work.  Harmless
    # (single-TC) on v5e/v6e.  For tiny shapes (e.g. the demo: Bp=8, Np=128)
    # there is nothing to split and the grid legitimately stays (1,1).
    if Bp // tm == 1 and Np // tn == 1:
        if Np >= 256 and (Np // 128) % 2 == 0:
            tn = Np // 2                      # multiple of 128, divides Np
        elif Bp >= 16:
            tm = _round_up(Bp // 2, 8)
            Bp = _round_up(B, tm)

    return tm, tn, tk, Bp, Kp, Np


def _fc_kernel_single_k(x_ref, w_ref, b_ref, out_ref, *, compute_dtype):
    """Fast path: whole K fits one tile -> no accumulator scratch, no branches."""
    x = x_ref[...].astype(compute_dtype)          # post-DMA cheap VPU cast (x is tiny)
    acc = jnp.dot(x, w_ref[...], preferred_element_type=jnp.float32)
    out_ref[...] = (acc + b_ref[...]).astype(out_ref.dtype)


def _fc_kernel_multi_k(x_ref, w_ref, b_ref, out_ref, acc_ref, *, compute_dtype):
    """K-tiled out = x @ W + b with f32 VMEM accumulator.

    Accumulator zeroed at k == 0; bias add + output cast only on the final K
    step (adding bias every step would be wrong).
    """
    k = pl.program_id(2)

    @pl.when(k == 0)
    def _():
        acc_ref[...] = jnp.zeros_like(acc_ref)

    x = x_ref[...].astype(compute_dtype)
    acc_ref[...] += jnp.dot(x, w_ref[...], preferred_element_type=jnp.float32)

    @pl.when(k == pl.num_programs(2) - 1)
    def _():
        out_ref[...] = (acc_ref[...] + b_ref[...]).astype(out_ref.dtype)


def prepare_fc_params(w_t, b, batch_size, compute_dtype=jnp.bfloat16):
    """One-time (outside the hot path) weight prep: cast to bf16 and pad to tiles.

    Args:
      w_t: (num_ftrs, num_classes) f32 — transposed nn.Linear weight.
      b:   (num_classes,) f32 — nn.Linear bias.
      batch_size: expected batch size (tile selection only).
    """
    K, N = w_t.shape
    tm, tn, tk, Bp, Kp, Np = _select_tiles(batch_size, K, N)

    w_p = w_t.astype(compute_dtype)               # stream 2 B/elem from HBM
    if (Kp, Np) != (K, N):
        w_p = jnp.pad(w_p, ((0, Kp - K), (0, Np - N)))  # zero-pad: matmul-safe
    b_p = b if Np == N else jnp.pad(b, (0, Np - N))
    b2d = b_p.reshape(1, Np).astype(jnp.float32)

    return {
        "w": w_p,
        "b2d": b2d,
        "K": K,
        "N": N,
        "tiles": (tm, tn, tk, Bp, Kp, Np),
        "compute_dtype": compute_dtype,
    }


def fully_connected_forward(x_nchw, params):
    """Forward pass of `fully_connected` with model = identity.

    Returns (out_1, out_3): flattened features (B, num_ftrs) and logits
    (B, num_classes).
    """
    B = x_nchw.shape[0]
    K, N = params["K"], params["N"]
    tm, tn, tk, Bp, Kp, Np = params["tiles"]
    compute_dtype = params["compute_dtype"]
    w_p, b2d = params["w"], params["b2d"]

    # self.model(x) -> identity; torch.flatten(x, 1) -> (B, num_ftrs).
    x_flat = x_nchw.reshape(B, -1)
    assert x_flat.shape[1] == K, (x_flat.shape, K)

    # x padding (if any) is tiny; W is already padded/cast in prepare_fc_params.
    x_p = x_flat if (Bp == B and Kp == K) else jnp.pad(
        x_flat, ((0, Bp - B), (0, Kp - K)))

    gm, gn, gk = Bp // tm, Np // tn, Kp // tk

    cost = pl.CostEstimate(
        flops=2 * Bp * Kp * Np,
        transcendentals=0,
        bytes_accessed=(4 * Bp * Kp            # x  (f32)
                        + 2 * Kp * Np          # W  (bf16)
                        + 4 * Bp * Np          # out (f32)
                        + 4 * Np),             # bias (f32)
    )
    compiler_kwargs = dict(vmem_limit_bytes=48 * 1024 * 1024)

    if gk == 1:
        # ---- single-K fast path: 2-D grid, no accumulator scratch ----------
        out_p = pl.pallas_call(
            functools.partial(_fc_kernel_single_k, compute_dtype=compute_dtype),
            out_shape=jax.ShapeDtypeStruct((Bp, Np), x_flat.dtype),
            grid_spec=pltpu.PrefetchScalarGridSpec(
                num_scalar_prefetch=0,
                grid=(gm, gn),
                in_specs=[
                    pl.BlockSpec((tm, Kp), lambda i, j: (i, 0)),   # x tile
                    pl.BlockSpec((Kp, tn), lambda i, j: (0, j)),   # W tile (bf16)
                    pl.BlockSpec((1, tn), lambda i, j: (0, j)),    # bias tile
                ],
                out_specs=pl.BlockSpec((tm, tn), lambda i, j: (i, j)),
            ),
            compiler_params=pltpu.CompilerParams(
                dimension_semantics=("parallel", "parallel"),
                **compiler_kwargs,
            ),
            cost_estimate=cost,
        )(x_p, w_p, b2d)
    else:
        # ---- general K-tiled path: 3-D grid, f32 VMEM accumulator ----------
        out_p = pl.pallas_call(
            functools.partial(_fc_kernel_multi_k, compute_dtype=compute_dtype),
            out_shape=jax.ShapeDtypeStruct((Bp, Np), x_flat.dtype),
            grid_spec=pltpu.PrefetchScalarGridSpec(
                num_scalar_prefetch=0,
                grid=(gm, gn, gk),
                in_specs=[
                    pl.BlockSpec((tm, tk), lambda i, j, k: (i, k)),   # x tile
                    pl.BlockSpec((tk, tn), lambda i, j, k: (k, j)),   # W tile (bf16)
                    pl.BlockSpec((1, tn), lambda i, j, k: (0, j)),    # bias tile
                ],
                out_specs=pl.BlockSpec((tm, tn), lambda i, j, k: (i, j)),
                scratch_shapes=[pltpu.VMEM((tm, tn), jnp.float32)],
            ),
            compiler_params=pltpu.CompilerParams(
                dimension_semantics=("parallel", "parallel", "arbitrary"),
                **compiler_kwargs,
            ),
            cost_estimate=cost,
        )(x_p, w_p, b2d)

    out_3 = out_p[:B, :N]
    out_1 = x_flat
    return out_1, out_3


if __name__ == "__main__":
    # Small shapes consistent with the module:
    #   x: (B=8, C=4, H=8, W=16)  ->  num_ftrs = 4*8*16 = 512, num_classes = 128
    B, C, H, W = 8, 4, 8, 16
    num_ftrs = C * H * W
    num_classes = 128

    key = jax.random.PRNGKey(0)
    kx, kw, kb = jax.random.split(key, 3)

    x = jax.random.normal(kx, (B, C, H, W), dtype=jnp.float32)
    # PyTorch nn.Linear weight is (num_classes, num_ftrs); we store its transpose.
    w_t = jax.random.normal(kw, (num_ftrs, num_classes), dtype=jnp.float32) * 0.02
    b = jax.random.normal(kb, (num_classes,), dtype=jnp.float32) * 0.01

    # One-time weight prep (cast to bf16 + pad) outside the hot path.
    params = prepare_fc_params(w_t, b, batch_size=B)
    jax.block_until_ready(params["w"])

    out_1, out_3 = fully_connected_forward(x, params)
    jax.block_until_ready((out_1, out_3))

    # Sanity checks against plain-JAX references.
    x_flat = x.reshape(B, -1)
    ref_f32 = x_flat @ w_t + b[None, :]
    # Reference matching the kernel's bf16-operand / f32-accumulate numerics.
    x_bf = x_flat.astype(jnp.bfloat16).astype(jnp.float32)
    w_bf = w_t.astype(jnp.bfloat16).astype(jnp.float32)
    ref_bf = x_bf @ w_bf + b[None, :]

    assert out_1.shape == (B, num_ftrs)
    assert out_3.shape == (B, num_classes)
    assert jnp.allclose(out_1, x_flat)
    assert jnp.allclose(out_3, ref_bf, atol=1e-2, rtol=1e-2)
    assert jnp.allclose(out_3, ref_f32, atol=5e-2, rtol=5e-2)

    print("KERNEL_OK")
</pallas_src>

<mosaic_0001>
module attributes {stable_mosaic.version = 11 : i64} {
  func.func @_fc_kernel_single_k(%arg0: i32, %arg1: i32, %arg2: memref<8x512xf32, #tpu.memory_space<vmem>>, %arg3: memref<512x128xbf16, #tpu.memory_space<vmem>>, %arg4: memref<1x128xf32, #tpu.memory_space<vmem>>, %arg5: memref<8x128xf32, #tpu.memory_space<vmem>>) attributes {dimension_semantics = [#tpu.dimension_semantics<parallel>, #tpu.dimension_semantics<parallel>], iteration_bounds = array<i64: 1, 1>, scalar_prefetch = 0 : i64, scratch_operands = 0 : i64, tpu.core_type = #tpu.core_type<tc>, window_params = [{transform_indices = @transform_0, window_bounds = array<i64: 8, 512>}, {transform_indices = @transform_1, window_bounds = array<i64: 512, 128>}, {transform_indices = @transform_2, window_bounds = array<i64: 1, 128>}, {transform_indices = @transform_3, window_bounds = array<i64: 8, 128>}]} {
    %c0 = arith.constant 0 : index
    %c0_0 = arith.constant 0 : index
    %0 = vector.load %arg2[%c0, %c0_0] : memref<8x512xf32, #tpu.memory_space<vmem>>, vector<8x512xf32>
    %1 = arith.truncf %0 : vector<8x512xf32> to vector<8x512xbf16>
    %c0_1 = arith.constant 0 : index
    %c0_2 = arith.constant 0 : index
    %2 = vector.load %arg3[%c0_1, %c0_2] : memref<512x128xbf16, #tpu.memory_space<vmem>>, vector<512x128xbf16>
    %cst = arith.constant dense<0.000000e+00> : vector<8x128xf32>
    %3 = tpu.matmul %1, %2, %cst {dimension_numbers = #tpu.dot_dimension_numbers<[1], [0], [0], [1], [0, 0, 1, 1], [], []>} : vector<8x512xbf16>, vector<512x128xbf16>, vector<8x128xf32> -> vector<8x128xf32>
    %c0_3 = arith.constant 0 : index
    %c0_4 = arith.constant 0 : index
    %4 = vector.load %arg4[%c0_3, %c0_4] : memref<1x128xf32, #tpu.memory_space<vmem>>, vector<1x128xf32>
    %5 = vector.broadcast %4 : vector<1x128xf32> to vector<8x128xf32>
    %6 = arith.addf %3, %5 : vector<8x128xf32>
    %c0_5 = arith.constant 0 : index
    %c0_6 = arith.constant 0 : index
    %7 = vector.load %arg5[%c0_5, %c0_6] : memref<8x128xf32, #tpu.memory_space<vmem>>, vector<8x128xf32>
    tpu.vector_store %arg5[%c0_5, %c0_6], %6 {strides = array<i32>} : memref<8x128xf32, #tpu.memory_space<vmem>>, vector<8x128xf32>,
    return
  }
  func.func @transform_0(%arg0: i32, %arg1: i32) -> (i32, i32) {
    %c0_i32 = arith.constant 0 : i32
    %c0_i32_0 = arith.constant 0 : i32
    return %arg0, %c0_i32 : i32, i32
  }
  func.func @transform_1(%arg0: i32, %arg1: i32) -> (i32, i32) {
    %c0_i32 = arith.constant 0 : i32
    %c0_i32_0 = arith.constant 0 : i32
    return %c0_i32, %arg1 : i32, i32
  }
  func.func @transform_2(%arg0: i32, %arg1: i32) -> (i32, i32) {
    %c0_i32 = arith.constant 0 : i32
    %c0_i32_0 = arith.constant 0 : i32
    return %c0_i32, %arg1 : i32, i32
  }
  func.func @transform_3(%arg0: i32, %arg1: i32) -> (i32, i32) {
    %c0_i32 = arith.constant 0 : i32
    return %arg0, %arg1 : i32, i32
  }
}

</mosaic_0001>

<bundles_post_ra>
// kernel: tpu_custom_call.1
= control target key start
LH: loop header
LB: loop body
LE: loop exit
PB: predicated region body
PF: predicated region fallthrough
CT: control target
= control target key end

     0   :  { %8 = vsyncpa [#allocation3], 0  ;;  %s667_s0 = inlined_call_operand.hbm [shape: f32[8,512], index: 0, kind: input, shape index: {}]   ;;  %s668_s1 = inlined_call_operand.hbm [shape: bf16[512,128], index: 1, kind: input, shape index: {}]   ;;  %s669_s2 = inlined_call_operand.vmem [shape: f32[1,128], index: 2, kind: input, shape index: {}]   ;;  %s670_s3 = inlined_call_operand.hbm [shape: f32[8,128], index: 3, kind: output, shape index: {}]  }
   0x1   :  { %9 = vsyncpa [#allocation6], 0 }
   0x2   :  { %10 = vsyncpa [#allocation4], 0  ;;  %s596_s12 = smov [#allocation2]   ;;  %s597_s14 = smov [#allocation5]  }
   0x3   :  { %s17_s13 = sshll.u32 %s596_s12, 4  ;;  %s26_s15 = sshll.u32 %s597_s14, 4  ;;  %s18_s13 = int_to_ptr.vmem [resolvable:$true] %s17_s13  ;;  %s621_s15 = int_to_ptr.vmem [resolvable:$true] %s26_s15 }
   0x4   :  { %s524_s18 = scalar_lea.hbm %s667_s0, 512 }
   0x5   :  { %p525_p0 = scmp.ne.s32.totalorder %s667_s0, %s524_s18  ;;  %p528_p1 = scmp.lt.u32.totalorder %s524_s18, %s667_s0 }
   0x7   :  { %p530_p2 = pnand %p528_p1, %p525_p0 }
   0x9   :  { %533 = shalt.err (!%p530_p2)
}
   0xa   :  { %s534_s23 = scalar_lea.vmem %s18_s13, 512  ;;  %p539_p4 = scmp.lt.s32.totalorder %s18_s13, %s18_s13 }
   0xb   :  { %p535_p3 = scmp.ne.s32.totalorder %s18_s13, %s534_s23  ;;  %p540_p5 = scmp.lt.s32.totalorder %s534_s23, %s534_s23 }
   0xd   :  { %p541_p6 = por %p540_p5, %p539_p4 }
   0xf   :  { %p542_p7 = pnand %p541_p6, %p535_p3 }
  0x11   :  { %545 = shalt.err (!%p542_p7)
}
  0x12   :  { %20 = dma.hbm_to_vmem [thread:$0]  %s667_s0, 512, %s18_s13, [#allocation3]  }
  0x13   :  { %s546_s28 = scalar_lea.hbm %s668_s1, 4096 }
  0x14   :  { %p547_p8 = scmp.ne.s32.totalorder %s668_s1, %s546_s28  ;;  %p550_p9 = scmp.lt.u32.totalorder %s546_s28, %s668_s1 }
  0x16   :  { %p552_p10 = pnand %p550_p9, %p547_p8 }
  0x18   :  { %555 = shalt.err (!%p552_p10)
}
  0x19   :  { %s556_s6 = scalar_lea.vmem %s621_s15, 4096  ;;  %p561_p12 = scmp.lt.s32.totalorder %s621_s15, %s621_s15 }
  0x1a   :  { %p557_p11 = scmp.ne.s32.totalorder %s621_s15, %s556_s6  ;;  %p562_p13 = scmp.lt.s32.totalorder %s556_s6, %s556_s6 }
  0x1c   :  { %p563_p0 = por %p562_p13, %p561_p12 }
  0x1e   :  { %p564_p1 = pnand %p563_p0, %p557_p11 }
  0x20   :  { %567 = shalt.err (!%p564_p1)
}
  0x21   :  { %s598_s0 = smov 64   ;;  %s599_s7 = smov 4  }
  0x22   :  { %32 = dma.hbm_to_vmem [thread:$0]  %s668_s1, 4096, %s621_s15, [#allocation6], %s598_s0, %s598_s0, %s599_s7  }
  0x23   :  { %590 = dma.done.wait [#allocation3], 512  }
  0x24   :  { %591 = vsyncadd [#allocation3], 4294966784 }
  0x25   :  { %592 = dma.done.wait [#allocation6], 4096  }
  0x26   :  { %593 = vsyncadd [#allocation6], 4294963200  ;;  %v492_v0 = vld [vmem:[#allocation5 + $0x40] sm:$0xff]   ;;  %v496_v4 = vld [vmem:[#allocation5 + $0x48] sm:$0xff]   ;;  %s600_s11 = smov [#allocation7]  }
  0x27   :  { %v493_v1 = vld [vmem:[#allocation5 + $0xc0] sm:$0xff]   ;;  %443 = vmatprep.subr.bf16.mxu0 %v492_v0  ;;  %v497_v5 = vld [vmem:[#allocation5 + $0xc8] sm:$0xff]   ;;  %v500_v8 = vld [vmem:[#allocation5 + $0x50] sm:$0xff]   ;;  %s400_s12 = sshll.u32 %s600_s11, 4  ;;  %s401_s12 = int_to_ptr.vmem [resolvable:$true] %s400_s12 }
  0x28   :  { %v494_v2 = vld [vmem:[#allocation5] sm:$0xff]   ;;  %465 = vmatprep.subr.bf16.mxu1 %v493_v1  ;;  %v498_v6 = vld [vmem:[#allocation5 + $0x8] sm:$0xff]   ;;  %v501_v9 = vld [vmem:[#allocation5 + $0xd0] sm:$0xff]   ;;  %s568_s13 = scalar_lea.vmem %s401_s12, 128  ;;  %p573_p3 = scmp.lt.s32.totalorder %s401_s12, %s401_s12 }
  0x29   :  { %v495_v3 = vld [vmem:[#allocation5 + $0x80] sm:$0xff]   ;;  %444 = vmatpush3.bf16.msra.mxu0 %v494_v2  ;;  %v499_v7 = vld [vmem:[#allocation5 + $0x88] sm:$0xff]   ;;  %v502_v10 = vld [vmem:[#allocation5 + $0x10] sm:$0xff]   ;;  %p569_p2 = scmp.ne.s32.totalorder %s401_s12, %s568_s13  ;;  %p574_p4 = scmp.lt.s32.totalorder %s568_s13, %s568_s13 }
  0x2a   :  { %466 = vmatpush3.bf16.msra.mxu1 %v495_v3  ;;  %445 = vmatprep.subr.bf16.mxu0 %v496_v4  ;;  %v503_v11 = vld [vmem:[#allocation5 + $0x90] sm:$0xff]   ;;  %v504_v12 = vld [vmem:[#allocation5 + $0x58] sm:$0xff]   ;;  %v508_v16 = vld [vmem:[#allocation5 + $0x60] sm:$0xff]  }
  0x2b   :  { %467 = vmatprep.subr.bf16.mxu1 %v497_v5  ;;  %v505_v13 = vld [vmem:[#allocation5 + $0xd8] sm:$0xff]   ;;  %v509_v17 = vld [vmem:[#allocation5 + $0xe0] sm:$0xff]   ;;  %v512_v20 = vld [vmem:[#allocation5 + $0x68] sm:$0xff]   ;;  %p575_p5 = por %p574_p4, %p573_p3 }
  0x2c   :  { %v506_v14 = vld [vmem:[#allocation5 + $0x18] sm:$0xff]   ;;  %v510_v18 = vld [vmem:[#allocation5 + $0x20] sm:$0xff]   ;;  %v513_v21 = vld [vmem:[#allocation5 + $0xe8] sm:$0xff]  }
  0x2d   :  { %446 = vmatpush3.bf16.msra.mxu0 %v498_v6  ;;  %v507_v15 = vld [vmem:[#allocation5 + $0x98] sm:$0xff]   ;;  %v511_v19 = vld [vmem:[#allocation5 + $0xa0] sm:$0xff]   ;;  %v514_v22 = vld [vmem:[#allocation5 + $0x28] sm:$0xff]   ;;  %p576_p6 = pnand %p575_p5, %p569_p2 }
  0x2e   :  { %468 = vmatpush3.bf16.msra.mxu1 %v499_v7  ;;  %447 = vmatprep.subr.bf16.mxu0 %v500_v8  ;;  %v515_v23 = vld [vmem:[#allocation5 + $0xa8] sm:$0xff]   ;;  %v516_v24 = vld [vmem:[#allocation5 + $0x70] sm:$0xff]   ;;  %v520_v28 = vld [vmem:[#allocation5 + $0x78] sm:$0xff]  }
  0x2f   :  { %469 = vmatprep.subr.bf16.mxu1 %v501_v9  ;;  %v517_v25 = vld [vmem:[#allocation5 + $0xf0] sm:$0xff]   ;;  %v521_v29 = vld [vmem:[#allocation5 + $0xf8] sm:$0xff]   ;;  %v43_v32 = vld [vmem:[#allocation2 + $0x8] sm:$0xff] }
  0x30   :  { %v518_v26 = vld [vmem:[#allocation5 + $0x30] sm:$0xff]   ;;  %v522_v30 = vld [vmem:[#allocation5 + $0x38] sm:$0xff]   ;;  %v42_v34 = vld [vmem:[#allocation2] sm:$0xff]  ;;  %v47_v35 = vpack.c.bf16 %v43_v32, %v43_v32 }
  0x31   :  { %448 = vmatpush3.bf16.msra.mxu0 %v502_v10  ;;  %v519_v27 = vld [vmem:[#allocation5 + $0xb0] sm:$0xff]   ;;  %v523_v31 = vld [vmem:[#allocation5 + $0xb8] sm:$0xff]   ;;  %v46_v37 = vpack.c.bf16 %v42_v34, %v42_v34  ;;  %v410_v42 = vld [vmem:[%s669_s2] ss:$0 sm:$0xff] }
  0x32   :  { %470 = vmatpush3.bf16.msra.mxu1 %v503_v11  ;;  %449 = vmatprep.subr.bf16.mxu0 %v504_v12  ;;  %v45_v33 = vld [vmem:[#allocation2 + $0x18] sm:$0xff]  ;;  %v44_v38 = vld [vmem:[#allocation2 + $0x10] sm:$0xff] }
  0x33   :  { %471 = vmatprep.subr.bf16.mxu1 %v505_v13  ;;  %v49_v36 = vpack.c.bf16 %v45_v33, %v45_v33  ;;  %v48_v39 = vpack.c.bf16 %v44_v38, %v44_v38  ;;  %345 = vmatprep.mubr.bf16.mxu0 %v47_v35 }
  0x35   :  { %450 = vmatpush3.bf16.msra.mxu0 %v506_v14  ;;  %385 = vmatprep.mubr.bf16.mxu1 %v49_v36 }
  0x36   :  { %472 = vmatpush3.bf16.msra.mxu1 %v507_v15  ;;  %451 = vmatprep.subr.bf16.mxu0 %v508_v16 }
  0x37   :  { %473 = vmatprep.subr.bf16.mxu1 %v509_v17 }
  0x39   :  { %452 = vmatpush3.bf16.msra.mxu0 %v510_v18 }
  0x3a   :  { %474 = vmatpush3.bf16.msra.mxu1 %v511_v19  ;;  %453 = vmatprep.subr.bf16.mxu0 %v512_v20 }
  0x3b   :  { %475 = vmatprep.subr.bf16.mxu1 %v513_v21 }
  0x3d   :  { %454 = vmatpush3.bf16.msra.mxu0 %v514_v22 }
  0x3e   :  { %476 = vmatpush3.bf16.msra.mxu1 %v515_v23  ;;  %455 = vmatprep.subr.bf16.mxu0 %v516_v24 }
  0x3f   :  { %477 = vmatprep.subr.bf16.mxu1 %v517_v25 }
  0x41   :  { %456 = vmatpush3.bf16.msra.mxu0 %v518_v26 }
  0x42   :  { %478 = vmatpush3.bf16.msra.mxu1 %v519_v27  ;;  %457 = vmatprep.subr.bf16.mxu0 %v520_v28 }
  0x43   :  { %479 = vmatprep.subr.bf16.mxu1 %v521_v29 }
  0x45   :  { %458 = vmatpush3.bf16.msra.mxu0 %v522_v30 }
  0x46   :  { %480 = vmatpush3.bf16.msra.mxu1 %v523_v31 }
  0x48   :  { %346 = vmatmul.mubr.bf16.vlgmr.msra.gmra.mrb[0].mxu0 %v46_v37 }
  0x49   :  { %386 = vmatmul.mubr.bf16.vlgmr.msra.gmra.mrb[0].mxu1 %v48_v39 }
 0x11b   :  { %v459_v40 = vpop.f32.mrb[0].mxu0 }
 0x11c   :  { %v481_v41 = vpop.f32.mrb[0].mxu1  ;;  %v460_v43 = vpop.f32.mrb[1].mxu0 }
 0x11d   :  { %v482_v44 = vpop.f32.mrb[1].mxu1  ;;  %v461_v45 = vadd.f32 %v460_v43, %v459_v40  ;;  %v462_v47 = vpop.f32.mrb[2].mxu0 }
 0x11e   :  { %v483_v46 = vadd.f32 %v482_v44, %v481_v41  ;;  %v484_v48 = vpop.f32.mrb[2].mxu1  ;;  %v463_v49 = vpop.f32.mrb[3].mxu0 }
 0x11f   :  { %v485_v50 = vpop.f32.mrb[3].mxu1  ;;  %v348_v51 = vadd.f32 %v461_v45, %v410_v42 }
 0x121   :  { %v388_v52 = vadd.f32 %v483_v46, %v348_v51 }
 0x123   :  { %393 = vst [vmem:[#allocation7] sm:$0xff] %v388_v52 }
 0x124   :  { %579 = shalt.err (!%p576_p6)
}
 0x125   :  { %s580_s15 = scalar_lea.hbm %s670_s3, 128 }
 0x126   :  { %p581_p7 = scmp.ne.s32.totalorder %s670_s3, %s580_s15  ;;  %p584_p8 = scmp.lt.u32.totalorder %s580_s15, %s670_s3 }
 0x128   :  { %p586_p9 = pnand %p584_p8, %p581_p7 }
 0x12a   :  { %589 = shalt.err (!%p586_p9)
}
 0x12b   :  { %403 = dma.vmem_to_hbm [thread:$0]  %s401_s12, 128, %s670_s3, [#allocation4]  }
 0x12c   :  { %594 = dma.done.wait [#allocation4], 128  }
 0x12d   :  { %595 = vsyncadd [#allocation4], 4294967168 }
 0x12e   :  { %407 = vsyncpa [#allocation3], 1 }
 0x12f   :  { %408 = vsyncpa [#allocation6], 1 }
 0x130   :  { %409 = vsyncpa [#allocation4], 1 }

</bundles_post_ra>
